<compile_context>
chip_gen: v6e
topology: v6e:2x2x1
jax: 0.10.0
libtpu: 0.0.40
codegen_flags: <defaults>
</compile_context>

<pallas_src>
import math
import functools

import jax
import jax.numpy as jnp
from jax import lax
from jax.experimental import pallas as pl
from jax.experimental.pallas import tpu as pltpu


def _mha_kernel(x_ref, wqkv_ref, bqkv_ref, wo_ref, bo_ref, o_ref, attn_ref,
                *, num_heads, batch, seq):
    """Single-step fused MHA.

    x_ref:    (B*S, E)    input rows (all batches folded)
    wqkv_ref: (E, 3E)     fused Linear_{q,k,v} + in_proj weights (bf16, Q pre-scaled)
    bqkv_ref: (1, 3E)     fused biases (f32)
    wo_ref:   (E, E)      out_proj weight (bf16)
    bo_ref:   (1, E)      out_proj bias (f32)
    o_ref:    (B*S, E)    output rows
    attn_ref: (B*S, E)    f32 VMEM scratch accumulating per-head attention outputs
    """
    E = x_ref.shape[1]
    H = num_heads
    dh = E // H

    # bf16 only for MXU operands; all elementwise math stays in f32 (v5e-safe).
    x = x_ref[...].astype(jnp.bfloat16)                                   # (B*S, E)

    # One fused affine projection over all B*S rows (Q already pre-scaled by
    # 1/sqrt(dh) on the host).  Single MXU matmul instead of six.
    qkv = (jnp.dot(x, wqkv_ref[...], preferred_element_type=jnp.float32)
           + bqkv_ref[...])                                               # (B*S, 3E) f32
    qkv_bf = qkv.astype(jnp.bfloat16)

    # Attention core: statically unrolled over (batch, head).  q/k/v are direct
    # lane slices of the qkv buffer; each head's P@V result is written straight
    # into the matching lane slice of the attn scratch (no stack / concat).
    for b in range(batch):
        r0 = b * seq
        for h in range(H):
            q_h = qkv_bf[r0:r0 + seq, 0 * E + h * dh:0 * E + (h + 1) * dh]  # (S, dh)
            k_h = qkv_bf[r0:r0 + seq, 1 * E + h * dh:1 * E + (h + 1) * dh]  # (S, dh)
            v_h = qkv_bf[r0:r0 + seq, 2 * E + h * dh:2 * E + (h + 1) * dh]  # (S, dh)

            # scores = q_h @ k_h^T (contract last dims; no explicit transpose)
            s = lax.dot_general(q_h, k_h, (((1,), (1,)), ((), ())),
                                preferred_element_type=jnp.float32)         # (S, S)
            s = s - jnp.max(s, axis=-1, keepdims=True)
            p = jnp.exp(s)
            p = p * pl.reciprocal(jnp.sum(p, axis=-1, keepdims=True), approx=True)

            a = jnp.dot(p.astype(jnp.bfloat16), v_h,
                        preferred_element_type=jnp.float32)                 # (S, dh)
            attn_ref[r0:r0 + seq, h * dh:(h + 1) * dh] = a

    # TODO(synk): attention-weight dropout omitted (eval/inference semantics);
    # attn_mask / key_padding_mask are not used by the module's forward.

    # out_proj over all rows at once.
    out = (jnp.dot(attn_ref[...].astype(jnp.bfloat16), wo_ref[...],
                   preferred_element_type=jnp.float32) + bo_ref[...])     # (B*S, E) f32
    o_ref[...] = out.astype(o_ref.dtype)


def fold_mha_params(params, num_heads):
    """One-time host-side algebraic fusion (hoisted out of the forward path):
    Linear_{q,k,v} followed by the packed in_proj is a single affine map; the
    1/sqrt(dh) attention scale is folded into the fused Q half.  Recompute
    whenever the underlying weights change."""
    wq, wk, wv, bq, bk, bv, w_in, b_in, wo, bo = params
    E = wq.shape[0]
    dh = E // num_heads
    scale = 1.0 / math.sqrt(dh)
    f32 = jnp.float32

    w_parts, b_parts = [], []
    for idx, (w, bias) in enumerate(((wq, bq), (wk, bk), (wv, bv))):
        w_in_s = w_in[:, idx * E:(idx + 1) * E].astype(f32)
        b_in_s = b_in[:, idx * E:(idx + 1) * E].astype(f32)
        w_f = w.astype(f32) @ w_in_s
        b_f = bias.astype(f32) @ w_in_s + b_in_s
        if idx == 0:  # pre-scale Q
            w_f = w_f * scale
            b_f = b_f * scale
        w_parts.append(w_f)
        b_parts.append(b_f)
    w_qkv = jnp.concatenate(w_parts, axis=1)                              # (E, 3E) f32
    b_qkv = jnp.concatenate(b_parts, axis=1)                              # (1, 3E) f32

    # bf16 for MXU operands only (halves weight DMA / VMEM); biases stay f32.
    return (w_qkv.astype(jnp.bfloat16), b_qkv,
            wo.astype(jnp.bfloat16), bo.astype(f32))


@functools.partial(jax.jit, static_argnums=(2,))
def multihead_attention_pallas(x, folded_params, num_heads):
    """x: (B, S, E); folded_params: output of fold_mha_params."""
    w_qkv_bf, b_qkv, wo_bf, bo = folded_params
    B, S, E = x.shape
    BS = B * S
    x2 = x.reshape(BS, E)  # free leading-dim merge; lanes untouched

    kern = functools.partial(_mha_kernel, num_heads=num_heads, batch=B, seq=S)
    out2 = pl.pallas_call(
        kern,
        out_shape=jax.ShapeDtypeStruct((BS, E), x.dtype),
        # No grid: single kernel step, whole (tiny) operands resident in VMEM.
        scratch_shapes=[pltpu.VMEM((BS, E), jnp.float32)],
    )(x2, w_qkv_bf, b_qkv, wo_bf, bo)
    return out2.reshape(B, S, E)


def multihead_attention_ref(x, params, num_heads):
    """Pure-JAX f32 reference with the module's original (unfused) structure —
    also validates the host-side weight folding."""
    wq, wk, wv, bq, bk, bv, w_in, b_in, wo, bo = params
    B, S, E = x.shape
    dh = E // num_heads
    q = x @ wq + bq
    k = x @ wk + bk
    v = x @ wv + bv
    q2 = q @ w_in[:, 0 * E:1 * E] + b_in[:, 0 * E:1 * E]
    k2 = k @ w_in[:, 1 * E:2 * E] + b_in[:, 1 * E:2 * E]
    v2 = v @ w_in[:, 2 * E:3 * E] + b_in[:, 2 * E:3 * E]
    qh = q2.reshape(B, S, num_heads, dh).transpose(0, 2, 1, 3)
    kh = k2.reshape(B, S, num_heads, dh).transpose(0, 2, 1, 3)
    vh = v2.reshape(B, S, num_heads, dh).transpose(0, 2, 1, 3)
    s = jnp.einsum("bhqd,bhkd->bhqk", qh, kh) / math.sqrt(dh)
    p = jax.nn.softmax(s, axis=-1)
    a = jnp.einsum("bhqk,bhkd->bhqd", p, vh).transpose(0, 2, 1, 3).reshape(B, S, E)
    return a @ wo + bo


if __name__ == "__main__":
    # Small shapes consistent with the module: batch=2, seq=8, input_size=32, heads=4
    B, S, E, H = 2, 8, 32, 4

    key = jax.random.PRNGKey(0)
    ks = jax.random.split(key, 12)
    bound = 1.0 / math.sqrt(E)
    u = lambda k, shape: jax.random.uniform(k, shape, jnp.float32, -bound, bound)

    # Parameters (deterministic init). Matrices stored pre-transposed (in, out).
    wq = u(ks[0], (E, E));  bq = u(ks[1], (1, E))
    wk = u(ks[2], (E, E));  bk = u(ks[3], (1, E))
    wv = u(ks[4], (E, E));  bv = u(ks[5], (1, E))
    w_in = u(ks[6], (E, 3 * E)); b_in = u(ks[7], (1, 3 * E))   # packed q/k/v in_proj
    wo = u(ks[8], (E, E));  bo = u(ks[9], (1, E))
    params = (wq, wk, wv, bq, bk, bv, w_in, b_in, wo, bo)

    x = jax.random.normal(ks[10], (B, S, E), jnp.float32)

    # One-time folding, outside the forward path (per perf review).
    folded = fold_mha_params(params, H)
    folded = tuple(jax.block_until_ready(p) for p in folded)

    out = multihead_attention_pallas(x, folded, H)
    out = jax.block_until_ready(out)

    ref = multihead_attention_ref(x, params, H)
    assert out.shape == (B, S, E)
    # bf16 MXU operands + approx reciprocal => loosened tolerance vs f32 reference.
    assert jnp.allclose(out, ref, atol=3e-2, rtol=3e-2), "mismatch vs reference"

    print("KERNEL_OK")
</pallas_src>

<mosaic_0001>
module attributes {stable_mosaic.version = 11 : i64} {
  func.func @_mha_kernel(%arg0: memref<16x32xf32, #tpu.memory_space<vmem>>, %arg1: memref<32x96xbf16, #tpu.memory_space<vmem>>, %arg2: memref<1x96xf32, #tpu.memory_space<vmem>>, %arg3: memref<32x32xbf16, #tpu.memory_space<vmem>>, %arg4: memref<1x32xf32, #tpu.memory_space<vmem>>, %arg5: memref<16x32xf32, #tpu.memory_space<vmem>>, %arg6: memref<16x32xf32, #tpu.memory_space<vmem>>) attributes {dimension_semantics = [], scalar_prefetch = 0 : i64, scratch_operands = 1 : i64, tpu.core_type = #tpu.core_type<tc>} {
    %c0 = arith.constant 0 : index
    %c0_0 = arith.constant 0 : index
    %0 = vector.load %arg0[%c0, %c0_0] : memref<16x32xf32, #tpu.memory_space<vmem>>, vector<16x32xf32>
    %1 = arith.truncf %0 : vector<16x32xf32> to vector<16x32xbf16>
    %c0_1 = arith.constant 0 : index
    %c0_2 = arith.constant 0 : index
    %2 = vector.load %arg1[%c0_1, %c0_2] : memref<32x96xbf16, #tpu.memory_space<vmem>>, vector<32x96xbf16>
    %cst = arith.constant dense<0.000000e+00> : vector<16x96xf32>
    %3 = tpu.matmul %1, %2, %cst {dimension_numbers = #tpu.dot_dimension_numbers<[1], [0], [0], [1], [0, 0, 1, 1], [], []>} : vector<16x32xbf16>, vector<32x96xbf16>, vector<16x96xf32> -> vector<16x96xf32>
    %c0_3 = arith.constant 0 : index
    %c0_4 = arith.constant 0 : index
    %4 = vector.load %arg2[%c0_3, %c0_4] : memref<1x96xf32, #tpu.memory_space<vmem>>, vector<1x96xf32>
    %5 = vector.broadcast %4 : vector<1x96xf32> to vector<16x96xf32>
    %6 = arith.addf %3, %5 : vector<16x96xf32>
    %7 = arith.truncf %6 : vector<16x96xf32> to vector<16x96xbf16>
    %8 = vector.extract_strided_slice %7 {offsets = [0, 0], sizes = [8, 8], strides = [1, 1]} : vector<16x96xbf16> to vector<8x8xbf16>
    %9 = vector.extract_strided_slice %7 {offsets = [0, 32], sizes = [8, 8], strides = [1, 1]} : vector<16x96xbf16> to vector<8x8xbf16>
    %10 = vector.extract_strided_slice %7 {offsets = [0, 64], sizes = [8, 8], strides = [1, 1]} : vector<16x96xbf16> to vector<8x8xbf16>
    %cst_5 = arith.constant dense<0.000000e+00> : vector<8x8xf32>
    %11 = tpu.matmul %8, %9, %cst_5 {dimension_numbers = #tpu.dot_dimension_numbers<[1], [1], [0], [0], [0, 0, 1, 0], [], []>} : vector<8x8xbf16>, vector<8x8xbf16>, vector<8x8xf32> -> vector<8x8xf32>
    %cst_6 = arith.constant dense<0xFF800000> : vector<8xf32>
    %12 = vector.multi_reduction <maximumf>, %11, %cst_6 [1] : vector<8x8xf32> to vector<8xf32>
    %13 = vector.shape_cast %12 : vector<8xf32> to vector<8x1xf32>
    %14 = vector.broadcast %13 : vector<8x1xf32> to vector<8x8xf32>
    %15 = arith.subf %11, %14 : vector<8x8xf32>
    %16 = math.exp %15 : vector<8x8xf32>
    %cst_7 = arith.constant dense<0.000000e+00> : vector<8xf32>
    %17 = vector.multi_reduction <add>, %16, %cst_7 [1] : vector<8x8xf32> to vector<8xf32>
    %18 = vector.shape_cast %17 : vector<8xf32> to vector<8x1xf32>
    %19 = tpu.reciprocal %18 {approx = true} : vector<8x1xf32> -> vector<8x1xf32>
    %20 = vector.broadcast %19 : vector<8x1xf32> to vector<8x8xf32>
    %21 = arith.mulf %16, %20 : vector<8x8xf32>
    %22 = arith.truncf %21 : vector<8x8xf32> to vector<8x8xbf16>
    %cst_8 = arith.constant dense<0.000000e+00> : vector<8x8xf32>
    %23 = tpu.matmul %22, %10, %cst_8 {dimension_numbers = #tpu.dot_dimension_numbers<[1], [0], [0], [1], [0, 0, 1, 1], [], []>} : vector<8x8xbf16>, vector<8x8xbf16>, vector<8x8xf32> -> vector<8x8xf32>
    %c0_9 = arith.constant 0 : index
    %c0_10 = arith.constant 0 : index
    %24 = vector.load %arg6[%c0_9, %c0_10] : memref<16x32xf32, #tpu.memory_space<vmem>>, vector<8x8xf32>
    tpu.vector_store %arg6[%c0_9, %c0_10], %23 {strides = array<i32>} : memref<16x32xf32, #tpu.memory_space<vmem>>, vector<8x8xf32>,
    %25 = vector.extract_strided_slice %7 {offsets = [0, 8], sizes = [8, 8], strides = [1, 1]} : vector<16x96xbf16> to vector<8x8xbf16>
    %26 = vector.extract_strided_slice %7 {offsets = [0, 40], sizes = [8, 8], strides = [1, 1]} : vector<16x96xbf16> to vector<8x8xbf16>
    %27 = vector.extract_strided_slice %7 {offsets = [0, 72], sizes = [8, 8], strides = [1, 1]} : vector<16x96xbf16> to vector<8x8xbf16>
    %cst_11 = arith.constant dense<0.000000e+00> : vector<8x8xf32>
    %28 = tpu.matmul %25, %26, %cst_11 {dimension_numbers = #tpu.dot_dimension_numbers<[1], [1], [0], [0], [0, 0, 1, 0], [], []>} : vector<8x8xbf16>, vector<8x8xbf16>, vector<8x8xf32> -> vector<8x8xf32>
    %cst_12 = arith.constant dense<0xFF800000> : vector<8xf32>
    %29 = vector.multi_reduction <maximumf>, %28, %cst_12 [1] : vector<8x8xf32> to vector<8xf32>
    %30 = vector.shape_cast %29 : vector<8xf32> to vector<8x1xf32>
    %31 = vector.broadcast %30 : vector<8x1xf32> to vector<8x8xf32>
    %32 = arith.subf %28, %31 : vector<8x8xf32>
    %33 = math.exp %32 : vector<8x8xf32>
    %cst_13 = arith.constant dense<0.000000e+00> : vector<8xf32>
    %34 = vector.multi_reduction <add>, %33, %cst_13 [1] : vector<8x8xf32> to vector<8xf32>
    %35 = vector.shape_cast %34 : vector<8xf32> to vector<8x1xf32>
    %36 = tpu.reciprocal %35 {approx = true} : vector<8x1xf32> -> vector<8x1xf32>
    %37 = vector.broadcast %36 : vector<8x1xf32> to vector<8x8xf32>
    %38 = arith.mulf %33, %37 : vector<8x8xf32>
    %39 = arith.truncf %38 : vector<8x8xf32> to vector<8x8xbf16>
    %cst_14 = arith.constant dense<0.000000e+00> : vector<8x8xf32>
    %40 = tpu.matmul %39, %27, %cst_14 {dimension_numbers = #tpu.dot_dimension_numbers<[1], [0], [0], [1], [0, 0, 1, 1], [], []>} : vector<8x8xbf16>, vector<8x8xbf16>, vector<8x8xf32> -> vector<8x8xf32>
    %c0_15 = arith.constant 0 : index
    %c8 = arith.constant 8 : index
    %41 = vector.load %arg6[%c0_15, %c8] : memref<16x32xf32, #tpu.memory_space<vmem>>, vector<8x8xf32>
    tpu.vector_store %arg6[%c0_15, %c8], %40 {strides = array<i32>} : memref<16x32xf32, #tpu.memory_space<vmem>>, vector<8x8xf32>,
    %42 = vector.extract_strided_slice %7 {offsets = [0, 16], sizes = [8, 8], strides = [1, 1]} : vector<16x96xbf16> to vector<8x8xbf16>
    %43 = vector.extract_strided_slice %7 {offsets = [0, 48], sizes = [8, 8], strides = [1, 1]} : vector<16x96xbf16> to vector<8x8xbf16>
    %44 = vector.extract_strided_slice %7 {offsets = [0, 80], sizes = [8, 8], strides = [1, 1]} : vector<16x96xbf16> to vector<8x8xbf16>
    %cst_16 = arith.constant dense<0.000000e+00> : vector<8x8xf32>
    %45 = tpu.matmul %42, %43, %cst_16 {dimension_numbers = #tpu.dot_dimension_numbers<[1], [1], [0], [0], [0, 0, 1, 0], [], []>} : vector<8x8xbf16>, vector<8x8xbf16>, vector<8x8xf32> -> vector<8x8xf32>
    %cst_17 = arith.constant dense<0xFF800000> : vector<8xf32>
    %46 = vector.multi_reduction <maximumf>, %45, %cst_17 [1] : vector<8x8xf32> to vector<8xf32>
    %47 = vector.shape_cast %46 : vector<8xf32> to vector<8x1xf32>
    %48 = vector.broadcast %47 : vector<8x1xf32> to vector<8x8xf32>
    %49 = arith.subf %45, %48 : vector<8x8xf32>
    %50 = math.exp %49 : vector<8x8xf32>
    %cst_18 = arith.constant dense<0.000000e+00> : vector<8xf32>
    %51 = vector.multi_reduction <add>, %50, %cst_18 [1] : vector<8x8xf32> to vector<8xf32>
    %52 = vector.shape_cast %51 : vector<8xf32> to vector<8x1xf32>
    %53 = tpu.reciprocal %52 {approx = true} : vector<8x1xf32> -> vector<8x1xf32>
    %54 = vector.broadcast %53 : vector<8x1xf32> to vector<8x8xf32>
    %55 = arith.mulf %50, %54 : vector<8x8xf32>
    %56 = arith.truncf %55 : vector<8x8xf32> to vector<8x8xbf16>
    %cst_19 = arith.constant dense<0.000000e+00> : vector<8x8xf32>
    %57 = tpu.matmul %56, %44, %cst_19 {dimension_numbers = #tpu.dot_dimension_numbers<[1], [0], [0], [1], [0, 0, 1, 1], [], []>} : vector<8x8xbf16>, vector<8x8xbf16>, vector<8x8xf32> -> vector<8x8xf32>
    %c0_20 = arith.constant 0 : index
    %c16 = arith.constant 16 : index
    %58 = vector.load %arg6[%c0_20, %c16] : memref<16x32xf32, #tpu.memory_space<vmem>>, vector<8x8xf32>
    tpu.vector_store %arg6[%c0_20, %c16], %57 {strides = array<i32>} : memref<16x32xf32, #tpu.memory_space<vmem>>, vector<8x8xf32>,
    %59 = vector.extract_strided_slice %7 {offsets = [0, 24], sizes = [8, 8], strides = [1, 1]} : vector<16x96xbf16> to vector<8x8xbf16>
    %60 = vector.extract_strided_slice %7 {offsets = [0, 56], sizes = [8, 8], strides = [1, 1]} : vector<16x96xbf16> to vector<8x8xbf16>
    %61 = vector.extract_strided_slice %7 {offsets = [0, 88], sizes = [8, 8], strides = [1, 1]} : vector<16x96xbf16> to vector<8x8xbf16>
    %cst_21 = arith.constant dense<0.000000e+00> : vector<8x8xf32>
    %62 = tpu.matmul %59, %60, %cst_21 {dimension_numbers = #tpu.dot_dimension_numbers<[1], [1], [0], [0], [0, 0, 1, 0], [], []>} : vector<8x8xbf16>, vector<8x8xbf16>, vector<8x8xf32> -> vector<8x8xf32>
    %cst_22 = arith.constant dense<0xFF800000> : vector<8xf32>
    %63 = vector.multi_reduction <maximumf>, %62, %cst_22 [1] : vector<8x8xf32> to vector<8xf32>
    %64 = vector.shape_cast %63 : vector<8xf32> to vector<8x1xf32>
    %65 = vector.broadcast %64 : vector<8x1xf32> to vector<8x8xf32>
    %66 = arith.subf %62, %65 : vector<8x8xf32>
    %67 = math.exp %66 : vector<8x8xf32>
    %cst_23 = arith.constant dense<0.000000e+00> : vector<8xf32>
    %68 = vector.multi_reduction <add>, %67, %cst_23 [1] : vector<8x8xf32> to vector<8xf32>
    %69 = vector.shape_cast %68 : vector<8xf32> to vector<8x1xf32>
    %70 = tpu.reciprocal %69 {approx = true} : vector<8x1xf32> -> vector<8x1xf32>
    %71 = vector.broadcast %70 : vector<8x1xf32> to vector<8x8xf32>
    %72 = arith.mulf %67, %71 : vector<8x8xf32>
    %73 = arith.truncf %72 : vector<8x8xf32> to vector<8x8xbf16>
    %cst_24 = arith.constant dense<0.000000e+00> : vector<8x8xf32>
    %74 = tpu.matmul %73, %61, %cst_24 {dimension_numbers = #tpu.dot_dimension_numbers<[1], [0], [0], [1], [0, 0, 1, 1], [], []>} : vector<8x8xbf16>, vector<8x8xbf16>, vector<8x8xf32> -> vector<8x8xf32>
    %c0_25 = arith.constant 0 : index
    %c24 = arith.constant 24 : index
    %75 = vector.load %arg6[%c0_25, %c24] : memref<16x32xf32, #tpu.memory_space<vmem>>, vector<8x8xf32>
    tpu.vector_store %arg6[%c0_25, %c24], %74 {strides = array<i32>} : memref<16x32xf32, #tpu.memory_space<vmem>>, vector<8x8xf32>,
    %76 = vector.extract_strided_slice %7 {offsets = [8, 0], sizes = [8, 8], strides = [1, 1]} : vector<16x96xbf16> to vector<8x8xbf16>
    %77 = vector.extract_strided_slice %7 {offsets = [8, 32], sizes = [8, 8], strides = [1, 1]} : vector<16x96xbf16> to vector<8x8xbf16>
    %78 = vector.extract_strided_slice %7 {offsets = [8, 64], sizes = [8, 8], strides = [1, 1]} : vector<16x96xbf16> to vector<8x8xbf16>
    %cst_26 = arith.constant dense<0.000000e+00> : vector<8x8xf32>
    %79 = tpu.matmul %76, %77, %cst_26 {dimension_numbers = #tpu.dot_dimension_numbers<[1], [1], [0], [0], [0, 0, 1, 0], [], []>} : vector<8x8xbf16>, vector<8x8xbf16>, vector<8x8xf32> -> vector<8x8xf32>
    %cst_27 = arith.constant dense<0xFF800000> : vector<8xf32>
    %80 = vector.multi_reduction <maximumf>, %79, %cst_27 [1] : vector<8x8xf32> to vector<8xf32>
    %81 = vector.shape_cast %80 : vector<8xf32> to vector<8x1xf32>
    %82 = vector.broadcast %81 : vector<8x1xf32> to vector<8x8xf32>
    %83 = arith.subf %79, %82 : vector<8x8xf32>
    %84 = math.exp %83 : vector<8x8xf32>
    %cst_28 = arith.constant dense<0.000000e+00> : vector<8xf32>
    %85 = vector.multi_reduction <add>, %84, %cst_28 [1] : vector<8x8xf32> to vector<8xf32>
    %86 = vector.shape_cast %85 : vector<8xf32> to vector<8x1xf32>
    %87 = tpu.reciprocal %86 {approx = true} : vector<8x1xf32> -> vector<8x1xf32>
    %88 = vector.broadcast %87 : vector<8x1xf32> to vector<8x8xf32>
    %89 = arith.mulf %84, %88 : vector<8x8xf32>
    %90 = arith.truncf %89 : vector<8x8xf32> to vector<8x8xbf16>
    %cst_29 = arith.constant dense<0.000000e+00> : vector<8x8xf32>
    %91 = tpu.matmul %90, %78, %cst_29 {dimension_numbers = #tpu.dot_dimension_numbers<[1], [0], [0], [1], [0, 0, 1, 1], [], []>} : vector<8x8xbf16>, vector<8x8xbf16>, vector<8x8xf32> -> vector<8x8xf32>
    %c8_30 = arith.constant 8 : index
    %c0_31 = arith.constant 0 : index
    %92 = vector.load %arg6[%c8_30, %c0_31] : memref<16x32xf32, #tpu.memory_space<vmem>>, vector<8x8xf32>
    tpu.vector_store %arg6[%c8_30, %c0_31], %91 {strides = array<i32>} : memref<16x32xf32, #tpu.memory_space<vmem>>, vector<8x8xf32>,
    %93 = vector.extract_strided_slice %7 {offsets = [8, 8], sizes = [8, 8], strides = [1, 1]} : vector<16x96xbf16> to vector<8x8xbf16>
    %94 = vector.extract_strided_slice %7 {offsets = [8, 40], sizes = [8, 8], strides = [1, 1]} : vector<16x96xbf16> to vector<8x8xbf16>
    %95 = vector.extract_strided_slice %7 {offsets = [8, 72], sizes = [8, 8], strides = [1, 1]} : vector<16x96xbf16> to vector<8x8xbf16>
    %cst_32 = arith.constant dense<0.000000e+00> : vector<8x8xf32>
    %96 = tpu.matmul %93, %94, %cst_32 {dimension_numbers = #tpu.dot_dimension_numbers<[1], [1], [0], [0], [0, 0, 1, 0], [], []>} : vector<8x8xbf16>, vector<8x8xbf16>, vector<8x8xf32> -> vector<8x8xf32>
    %cst_33 = arith.constant dense<0xFF800000> : vector<8xf32>
    %97 = vector.multi_reduction <maximumf>, %96, %cst_33 [1] : vector<8x8xf32> to vector<8xf32>
    %98 = vector.shape_cast %97 : vector<8xf32> to vector<8x1xf32>
    %99 = vector.broadcast %98 : vector<8x1xf32> to vector<8x8xf32>
    %100 = arith.subf %96, %99 : vector<8x8xf32>
    %101 = math.exp %100 : vector<8x8xf32>
    %cst_34 = arith.constant dense<0.000000e+00> : vector<8xf32>
    %102 = vector.multi_reduction <add>, %101, %cst_34 [1] : vector<8x8xf32> to vector<8xf32>
    %103 = vector.shape_cast %102 : vector<8xf32> to vector<8x1xf32>
    %104 = tpu.reciprocal %103 {approx = true} : vector<8x1xf32> -> vector<8x1xf32>
    %105 = vector.broadcast %104 : vector<8x1xf32> to vector<8x8xf32>
    %106 = arith.mulf %101, %105 : vector<8x8xf32>
    %107 = arith.truncf %106 : vector<8x8xf32> to vector<8x8xbf16>
    %cst_35 = arith.constant dense<0.000000e+00> : vector<8x8xf32>
    %108 = tpu.matmul %107, %95, %cst_35 {dimension_numbers = #tpu.dot_dimension_numbers<[1], [0], [0], [1], [0, 0, 1, 1], [], []>} : vector<8x8xbf16>, vector<8x8xbf16>, vector<8x8xf32> -> vector<8x8xf32>
    %c8_36 = arith.constant 8 : index
    %c8_37 = arith.constant 8 : index
    %109 = vector.load %arg6[%c8_36, %c8_37] : memref<16x32xf32, #tpu.memory_space<vmem>>, vector<8x8xf32>
    tpu.vector_store %arg6[%c8_36, %c8_37], %108 {strides = array<i32>} : memref<16x32xf32, #tpu.memory_space<vmem>>, vector<8x8xf32>,
    %110 = vector.extract_strided_slice %7 {offsets = [8, 16], sizes = [8, 8], strides = [1, 1]} : vector<16x96xbf16> to vector<8x8xbf16>
    %111 = vector.extract_strided_slice %7 {offsets = [8, 48], sizes = [8, 8], strides = [1, 1]} : vector<16x96xbf16> to vector<8x8xbf16>
    %112 = vector.extract_strided_slice %7 {offsets = [8, 80], sizes = [8, 8], strides = [1, 1]} : vector<16x96xbf16> to vector<8x8xbf16>
    %cst_38 = arith.constant dense<0.000000e+00> : vector<8x8xf32>
    %113 = tpu.matmul %110, %111, %cst_38 {dimension_numbers = #tpu.dot_dimension_numbers<[1], [1], [0], [0], [0, 0, 1, 0], [], []>} : vector<8x8xbf16>, vector<8x8xbf16>, vector<8x8xf32> -> vector<8x8xf32>
    %cst_39 = arith.constant dense<0xFF800000> : vector<8xf32>
    %114 = vector.multi_reduction <maximumf>, %113, %cst_39 [1] : vector<8x8xf32> to vector<8xf32>
    %115 = vector.shape_cast %114 : vector<8xf32> to vector<8x1xf32>
    %116 = vector.broadcast %115 : vector<8x1xf32> to vector<8x8xf32>
    %117 = arith.subf %113, %116 : vector<8x8xf32>
    %118 = math.exp %117 : vector<8x8xf32>
    %cst_40 = arith.constant dense<0.000000e+00> : vector<8xf32>
    %119 = vector.multi_reduction <add>, %118, %cst_40 [1] : vector<8x8xf32> to vector<8xf32>
    %120 = vector.shape_cast %119 : vector<8xf32> to vector<8x1xf32>
    %121 = tpu.reciprocal %120 {approx = true} : vector<8x1xf32> -> vector<8x1xf32>
    %122 = vector.broadcast %121 : vector<8x1xf32> to vector<8x8xf32>
    %123 = arith.mulf %118, %122 : vector<8x8xf32>
    %124 = arith.truncf %123 : vector<8x8xf32> to vector<8x8xbf16>
    %cst_41 = arith.constant dense<0.000000e+00> : vector<8x8xf32>
    %125 = tpu.matmul %124, %112, %cst_41 {dimension_numbers = #tpu.dot_dimension_numbers<[1], [0], [0], [1], [0, 0, 1, 1], [], []>} : vector<8x8xbf16>, vector<8x8xbf16>, vector<8x8xf32> -> vector<8x8xf32>
    %c8_42 = arith.constant 8 : index
    %c16_43 = arith.constant 16 : index
    %126 = vector.load %arg6[%c8_42, %c16_43] : memref<16x32xf32, #tpu.memory_space<vmem>>, vector<8x8xf32>
    tpu.vector_store %arg6[%c8_42, %c16_43], %125 {strides = array<i32>} : memref<16x32xf32, #tpu.memory_space<vmem>>, vector<8x8xf32>,
    %127 = vector.extract_strided_slice %7 {offsets = [8, 24], sizes = [8, 8], strides = [1, 1]} : vector<16x96xbf16> to vector<8x8xbf16>
    %128 = vector.extract_strided_slice %7 {offsets = [8, 56], sizes = [8, 8], strides = [1, 1]} : vector<16x96xbf16> to vector<8x8xbf16>
    %129 = vector.extract_strided_slice %7 {offsets = [8, 88], sizes = [8, 8], strides = [1, 1]} : vector<16x96xbf16> to vector<8x8xbf16>
    %cst_44 = arith.constant dense<0.000000e+00> : vector<8x8xf32>
    %130 = tpu.matmul %127, %128, %cst_44 {dimension_numbers = #tpu.dot_dimension_numbers<[1], [1], [0], [0], [0, 0, 1, 0], [], []>} : vector<8x8xbf16>, vector<8x8xbf16>, vector<8x8xf32> -> vector<8x8xf32>
    %cst_45 = arith.constant dense<0xFF800000> : vector<8xf32>
    %131 = vector.multi_reduction <maximumf>, %130, %cst_45 [1] : vector<8x8xf32> to vector<8xf32>
    %132 = vector.shape_cast %131 : vector<8xf32> to vector<8x1xf32>
    %133 = vector.broadcast %132 : vector<8x1xf32> to vector<8x8xf32>
    %134 = arith.subf %130, %133 : vector<8x8xf32>
    %135 = math.exp %134 : vector<8x8xf32>
    %cst_46 = arith.constant dense<0.000000e+00> : vector<8xf32>
    %136 = vector.multi_reduction <add>, %135, %cst_46 [1] : vector<8x8xf32> to vector<8xf32>
    %137 = vector.shape_cast %136 : vector<8xf32> to vector<8x1xf32>
    %138 = tpu.reciprocal %137 {approx = true} : vector<8x1xf32> -> vector<8x1xf32>
    %139 = vector.broadcast %138 : vector<8x1xf32> to vector<8x8xf32>
    %140 = arith.mulf %135, %139 : vector<8x8xf32>
    %141 = arith.truncf %140 : vector<8x8xf32> to vector<8x8xbf16>
    %cst_47 = arith.constant dense<0.000000e+00> : vector<8x8xf32>
    %142 = tpu.matmul %141, %129, %cst_47 {dimension_numbers = #tpu.dot_dimension_numbers<[1], [0], [0], [1], [0, 0, 1, 1], [], []>} : vector<8x8xbf16>, vector<8x8xbf16>, vector<8x8xf32> -> vector<8x8xf32>
    %c8_48 = arith.constant 8 : index
    %c24_49 = arith.constant 24 : index
    %143 = vector.load %arg6[%c8_48, %c24_49] : memref<16x32xf32, #tpu.memory_space<vmem>>, vector<8x8xf32>
    tpu.vector_store %arg6[%c8_48, %c24_49], %142 {strides = array<i32>} : memref<16x32xf32, #tpu.memory_space<vmem>>, vector<8x8xf32>,
    %c0_50 = arith.constant 0 : index
    %c0_51 = arith.constant 0 : index
    %144 = vector.load %arg6[%c0_50, %c0_51] : memref<16x32xf32, #tpu.memory_space<vmem>>, vector<16x32xf32>
    %145 = arith.truncf %144 : vector<16x32xf32> to vector<16x32xbf16>
    %c0_52 = arith.constant 0 : index
    %c0_53 = arith.constant 0 : index
    %146 = vector.load %arg3[%c0_52, %c0_53] : memref<32x32xbf16, #tpu.memory_space<vmem>>, vector<32x32xbf16>
    %cst_54 = arith.constant dense<0.000000e+00> : vector<16x32xf32>
    %147 = tpu.matmul %145, %146, %cst_54 {dimension_numbers = #tpu.dot_dimension_numbers<[1], [0], [0], [1], [0, 0, 1, 1], [], []>} : vector<16x32xbf16>, vector<32x32xbf16>, vector<16x32xf32> -> vector<16x32xf32>
    %c0_55 = arith.constant 0 : index
    %c0_56 = arith.constant 0 : index
    %148 = vector.load %arg4[%c0_55, %c0_56] : memref<1x32xf32, #tpu.memory_space<vmem>>, vector<1x32xf32>
    %149 = vector.broadcast %148 : vector<1x32xf32> to vector<16x32xf32>
    %150 = arith.addf %147, %149 : vector<16x32xf32>
    %c0_57 = arith.constant 0 : index
    %c0_58 = arith.constant 0 : index
    %151 = vector.load %arg5[%c0_57, %c0_58] : memref<16x32xf32, #tpu.memory_space<vmem>>, vector<16x32xf32>
    tpu.vector_store %arg5[%c0_57, %c0_58], %150 {strides = array<i32>} : memref<16x32xf32, #tpu.memory_space<vmem>>, vector<16x32xf32>,
    return
  }
}

</mosaic_0001>

<bundles_post_ra>
// kernel: multihead_attention_pallas.1
= control target key start
LH: loop header
LB: loop body
LE: loop exit
PB: predicated region body
PF: predicated region fallthrough
CT: control target
= control target key end

     0   :  { %10 = vsyncpa [#allocation4], 0  ;;  %s1727_s0 = inlined_call_operand.hbm [shape: f32[16,32], index: 0, kind: input, shape index: {}]   ;;  %s1728_s1 = inlined_call_operand.hbm [shape: bf16[32,96], index: 1, kind: input, shape index: {}]   ;;  %s1729_s2 = inlined_call_operand.vmem [shape: f32[1,96], index: 2, kind: input, shape index: {}]   ;;  %s1730_s3 = inlined_call_operand.hbm [shape: bf16[32,32], index: 3, kind: input, shape index: {}]   ;;  %s1731_s4 = inlined_call_operand.vmem [shape: f32[1,32], index: 4, kind: input, shape index: {}]   ;;  %s1732_s5 = inlined_call_operand.hbm [shape: f32[16,32], index: 5, kind: output, shape index: {}]  }
   0x1   :  { %11 = vsyncpa [#allocation7], 0 }
   0x2   :  { %12 = vsyncpa [#allocation5], 0  ;;  %s1458_s18 = smov [#allocation6]  }
   0x3   :  { %s30_s19 = sshll.u32 %s1458_s18, 4  ;;  %s31_s19 = int_to_ptr.vmem [resolvable:$true] %s30_s19 }
   0x4   :  { %s1380_s20 = scalar_lea.vmem %s31_s19, 256  ;;  %p1385_p1 = scmp.lt.s32.totalorder %s31_s19, %s31_s19 }
   0x5   :  { %p1381_p0 = scmp.ne.s32.totalorder %s31_s19, %s1380_s20  ;;  %p1386_p2 = scmp.lt.s32.totalorder %s1380_s20, %s1380_s20 }
   0x7   :  { %p1387_p3 = por %p1386_p2, %p1385_p1 }
   0x9   :  { %p1388_p4 = pnand %p1387_p3, %p1381_p0 }
   0xb   :  { %1391 = shalt.err (!%p1388_p4)
}
   0xc   :  { %s1459_s21 = smov 64   ;;  %s1460_s22 = smov 4  }
   0xd   :  { %36 = dma.hbm_to_vmem [thread:$0]  %s1728_s1, 256, %s31_s19, [#allocation7], %s1459_s21, %s1459_s21, %s1460_s22  }
   0xe   :  { %s1461_s25 = smov [#allocation3]  }
   0xf   :  { %s18_s26 = sshll.u32 %s1461_s25, 4  ;;  %s19_s26 = int_to_ptr.vmem [resolvable:$true] %s18_s26 }
  0x10   :  { %s1400_s27 = scalar_lea.vmem %s19_s26, 256  ;;  %p1405_p6 = scmp.lt.s32.totalorder %s19_s26, %s19_s26 }
  0x11   :  { %p1401_p5 = scmp.ne.s32.totalorder %s19_s26, %s1400_s27  ;;  %p1406_p7 = scmp.lt.s32.totalorder %s1400_s27, %s1400_s27 }
  0x13   :  { %p1407_p8 = por %p1406_p7, %p1405_p6 }
  0x15   :  { %p1408_p9 = pnand %p1407_p8, %p1401_p5 }
  0x17   :  { %1411 = shalt.err (!%p1408_p9)
}
  0x18   :  { %s1462_s28 = smov 128   ;;  %s1463_s29 = smov 8  }
  0x19   :  { %24 = dma.hbm_to_vmem [thread:$0]  %s1727_s0, 256, %s19_s26, [#allocation4], %s1462_s28, %s1462_s28, %s1463_s29  }
  0x1a   :  { %s1464_s1 = smov [#allocation8]  }
  0x1b   :  { %s44_s7 = sshll.u32 %s1464_s1, 4  ;;  %s45_s7 = int_to_ptr.vmem [resolvable:$true] %s44_s7 }
  0x1c   :  { %s1420_s8 = scalar_lea.vmem %s45_s7, 256  ;;  %p1425_p11 = scmp.lt.s32.totalorder %s45_s7, %s45_s7 }
  0x1d   :  { %p1421_p10 = scmp.ne.s32.totalorder %s45_s7, %s1420_s8  ;;  %p1426_p12 = scmp.lt.s32.totalorder %s1420_s8, %s1420_s8 }
  0x1f   :  { %p1427_p13 = por %p1426_p12, %p1425_p11 }
  0x21   :  { %p1428_p0 = pnand %p1427_p13, %p1421_p10 }
  0x23   :  { %1431 = shalt.err (!%p1428_p0)
}
  0x24   :  { %50 = dma.hbm_to_vmem [thread:$0]  %s1730_s3, 256, %s45_s7, [#allocation7], %s1459_s21, %s1459_s21, %s1460_s22  }
  0x25   :  { %1452 = dma.done.wait [#allocation4], 256  }
  0x26   :  { %1453 = vsyncadd [#allocation4], 4294967040 }
  0x27   :  { %1454 = dma.done.wait [#allocation7], 512  }
  0x28   :  { %1455 = vsyncadd [#allocation7], 4294966784  ;;  %v1465_v0 = vmov 0.0   ;;  %vm1466_vm0 = vmmov 0   ;;  %v1336_v1 = vld [vmem:[#allocation6 + $0x8] sm:$0xff]   ;;  %v1337_v2 = vld [vmem:[#allocation6] sm:$0xff]  }
  0x29   :  { %1202 = vmatprep.subr.bf16.mxu0 %v1465_v0  ;;  %1206 = vmatprep.mubr.msk.bf16.mxu0 %vm1466_vm0, %v1465_v0  ;;  %v63_v3 = vld [vmem:[#allocation3] sm:$0xff]  ;;  %v64_v4 = vld [vmem:[#allocation3 + $0x8] sm:$0xff]  ;;  %vm89_vm1 = vcmask 261120   ;;  %v1140_v7 = vld [vmem:[%s1729_s2] ss:$0 sm:$0xff]  ;;  %s1467_s11 = smov 120  }
  0x2a   :  { %1210 = vmatprep.subr.bf16.mxu1 %v1465_v0  ;;  %1212 = vmatprep.mubr.msk.bf16.mxu1 %vm1466_vm0, %v1465_v0  ;;  %v65_v5 = vpack.c.bf16 %v64_v4, %v63_v3  ;;  %s1468_s12 = smov 96   ;;  %s1469_s13 = smov 80   ;;  %vm138_vm2 = vcmask 64512   ;;  %vm202_vm3 = vcmask 1043456   ;;  %vm361_vm4 = vcmask 130112  }
  0x2b   :  { %1203 = vmatpush3.bf16.msra.mxu0 %v1336_v1  ;;  %s1470_s14 = smov 88   ;;  %s1471_s2 = smov 72   ;;  %vm477_vm5 = vcmask 195712   ;;  %vm593_vm6 = vcmask 261312  }
  0x2c   :  { %1204 = vmatprep.subr.bf16.mxu0 %v1465_v0  ;;  %s1472_s15 = smov 112   ;;  %s1473_s16 = smov 104  }
  0x2d   :  { %s1474_s17 = smov 56   ;;  %s1475_s18 = smov 48  }
  0x2e   :  { %s1476_s19 = smov 40   ;;  %s1477_s20 = smov 16  }
  0x2f   :  { %1205 = vmatpush3.bf16.msra.mxu0 %v1337_v2  ;;  %s1479_s24 = smov [#allocation9]  }
  0x30   :  { %1216 = vmatprep.subr.bf16.mxu0 %v1465_v0  ;;  %s1127_s25 = sshll.u32 %s1479_s24, 4  ;;  %s1128_s25 = int_to_ptr.vmem [resolvable:$true] %s1127_s25 }
  0x31   :  { %s1432_s26 = scalar_lea.vmem %s1128_s25, 256  ;;  %p1437_p2 = scmp.lt.s32.totalorder %s1128_s25, %s1128_s25 }
  0x32   :  { %1207 = vmatmul.mubr.msk.bf16.vlgmr.msra.gmra.mxu0 %vm89_vm1, %v65_v5  ;;  %p1433_p1 = scmp.ne.s32.totalorder %s1128_s25, %s1432_s26  ;;  %p1438_p3 = scmp.lt.s32.totalorder %s1432_s26, %s1432_s26 }
  0x33   :  { %1218 = vmatprep.mubr.msk.bf16.mxu0 %vm1466_vm0, %v1465_v0 }
  0x34   :  { %p1439_p4 = por %p1438_p3, %p1437_p2 }
  0x36   :  { %p1440_p5 = pnand %p1439_p4, %p1433_p1 }
  0xf2   :  { %v127_v6 = vpop.f32.mrf.mxu0 }
  0xf3   :  { %v128_v10 = vadd.f32 %v1140_v7, %v127_v6 }
  0xf4   :  { %v1208_v8 = vpop.f32.mrf.mxu0 }
  0xf6   :  { %v130_v9 = vpop.f32.mrf.mxu0 }
  0xf7   :  { %v131_v11 = vadd.f32 %v1140_v7, %v130_v9 }
  0xf8   :  { %v1209_v12 = vpop.f32.mrf.mxu0 }
  0xf9   :  { %v1540_v13 = vpack.c.bf16 %v131_v11, %v128_v10 }
  0xfb   :  { %247 = vrot.lane.b32.xlu1 %v1540_v13, %s1467_s11  ;;  %136 = vrot.lane.b32.xlu0 %v1540_v13, %s1468_s12  ;;  %v1549_v14 = vrot.slane %v1540_v13, 4 }
  0xff   :  { %365 = vrot.lane.b32.xlu1 %v1540_v13, %s1469_s13  ;;  %249 = vrot.lane.b32.xlu0 %v1540_v13, %s1470_s14 }
 0x103   :  { %481 = vrot.lane.b32.xlu1 %v1540_v13, %s1471_s2  ;;  %363 = vrot.lane.b32.xlu0 %v1540_v13, %s1472_s15 }
 0x107   :  { %479 = vrot.lane.b32.xlu0 %v1540_v13, %s1473_s16  ;;  %596 = vrot.lane.b32.xlu1 %v1549_v14, %s1468_s12 }
 0x10b   :  { %707 = vrot.lane.b32.xlu0 %v1549_v14, %s1470_s14  ;;  %705 = vrot.lane.b32.xlu1 %v1549_v14, %s1467_s11 }
 0x10f   :  { %822 = vrot.lane.b32.xlu0 %v1549_v14, %s1469_s13  ;;  %820 = vrot.lane.b32.xlu1 %v1549_v14, %s1472_s15 }
 0x113   :  { %937 = vrot.lane.b32.xlu0 %v1549_v14, %s1471_s2  ;;  %935 = vrot.lane.b32.xlu1 %v1549_v14, %s1473_s16 }
 0x16d   :  { %v137_v15 = vpop.permute.xlu0 %136  ;;  %v248_v18 = vpop.permute.xlu1 %247 }
 0x16e   :  { %v143_v16 = vsel %vm138_vm2, %v137_v15, 0 }
 0x16f   :  { %1211 = vmatpush3.bf16.xpose.msra.mxu1 %v143_v16 }
 0x170   :  { %1222 = vmatprep.subr.bf16.mxu1 %v1465_v0 }
 0x171   :  { %v250_v17 = vpop.permute.xlu0 %249  ;;  %v366_v20 = vpop.permute.xlu1 %365 }
 0x172   :  { %v255_v19 = vsel %vm138_vm2, %v250_v17, 0  ;;  %v371_v21 = vsel %vm138_vm2, %v366_v20, 0 }
 0x175   :  { %v482_v22 = vpop.permute.xlu1 %481  ;;  %v364_v23 = vpop.permute.xlu0 %363 }
 0x176   :  { %1213 = vmatmul.mubr.msk.bf16.vlgmr.msra.gmra.mxu1 %vm138_vm2, %v1540_v13  ;;  %v487_v24 = vsel %vm138_vm2, %v482_v22, 0 }
 0x177   :  { %1223 = vmatpush3.bf16.xpose.msra.mxu1 %v255_v19  ;;  %1224 = vmatprep.mubr.msk.bf16.mxu1 %vm1466_vm0, %v1465_v0 }
 0x178   :  { %1234 = vmatprep.subr.bf16.mxu1 %v1465_v0 }
 0x179   :  { %v597_v25 = vpop.permute.xlu1 %596  ;;  %v480_v26 = vpop.permute.xlu0 %479 }
 0x17a   :  { %v602_v27 = vsel %vm138_vm2, %v597_v25, 0 }
 0x17d   :  { %v708_v28 = vpop.permute.xlu0 %707  ;;  %v706_v31 = vpop.permute.xlu1 %705 }
 0x17e   :  { %1225 = vmatmul.mubr.msk.bf16.vlgmr.msra.gmra.mxu1 %vm138_vm2, %v248_v18  ;;  %v713_v29 = vsel %vm138_vm2, %v708_v28, 0 }
 0x17f   :  { %1235 = vmatpush3.bf16.xpose.msra.mxu1 %v371_v21  ;;  %1236 = vmatprep.mubr.msk.bf16.mxu1 %vm1466_vm0, %v1465_v0 }
 0x180   :  { %1246 = vmatprep.subr.bf16.mxu1 %v1465_v0 }
 0x181   :  { %v823_v30 = vpop.permute.xlu0 %822  ;;  %v821_v34 = vpop.permute.xlu1 %820 }
 0x182   :  { %v828_v32 = vsel %vm138_vm2, %v823_v30, 0 }
 0x185   :  { %v938_v33 = vpop.permute.xlu0 %937  ;;  %v936_v36 = vpop.permute.xlu1 %935 }
 0x186   :  { %1237 = vmatmul.mubr.msk.bf16.vlgmr.msra.gmra.mxu1 %vm138_vm2, %v364_v23  ;;  %v943_v35 = vsel %vm138_vm2, %v938_v33, 0 }
 0x187   :  { %1247 = vmatpush3.bf16.xpose.msra.mxu1 %v487_v24  ;;  %1248 = vmatprep.mubr.msk.bf16.mxu1 %vm1466_vm0, %v1465_v0 }
 0x188   :  { %1258 = vmatprep.subr.bf16.mxu1 %v1465_v0 }
 0x18e   :  { %1249 = vmatmul.mubr.msk.bf16.vlgmr.msra.gmra.mxu1 %vm138_vm2, %v480_v26 }
 0x18f   :  { %1259 = vmatpush3.bf16.xpose.msra.mxu1 %v602_v27  ;;  %1260 = vmatprep.mubr.msk.bf16.mxu1 %vm1466_vm0, %v1465_v0 }
 0x190   :  { %1270 = vmatprep.subr.bf16.mxu1 %v1465_v0 }
 0x196   :  { %1261 = vmatmul.mubr.msk.bf16.vlgmr.msra.gmra.mxu1 %vm138_vm2, %v1549_v14 }
 0x197   :  { %1271 = vmatpush3.bf16.xpose.msra.mxu1 %v713_v29  ;;  %1272 = vmatprep.mubr.msk.bf16.mxu1 %vm1466_vm0, %v1465_v0 }
 0x198   :  { %1282 = vmatprep.subr.bf16.mxu1 %v1465_v0 }
 0x19e   :  { %1273 = vmatmul.mubr.msk.bf16.vlgmr.msra.gmra.mxu1 %vm138_vm2, %v706_v31 }
 0x19f   :  { %1283 = vmatpush3.bf16.xpose.msra.mxu1 %v828_v32  ;;  %1284 = vmatprep.mubr.msk.bf16.mxu1 %vm1466_vm0, %v1465_v0 }
 0x1a0   :  { %1294 = vmatprep.subr.bf16.mxu1 %v1465_v0 }
 0x1a6   :  { %1285 = vmatmul.mubr.msk.bf16.vlgmr.msra.gmra.mxu1 %vm138_vm2, %v821_v34 }
 0x1a7   :  { %1295 = vmatpush3.bf16.xpose.msra.mxu1 %v943_v35  ;;  %1296 = vmatprep.mubr.msk.bf16.mxu1 %vm1466_vm0, %v1465_v0 }
 0x1a8   :  { %1306 = vmatprep.subr.bf16.mxu1 %v1465_v0 }
 0x1ae   :  { %1297 = vmatmul.mubr.msk.bf16.vlgmr.msra.gmra.mxu1 %vm138_vm2, %v936_v36 }
 0x1af   :  { %1310 = vmatprep.mubr.msk.bf16.mxu1 %vm1466_vm0, %v1465_v0 }
 0x236   :  { %v179_v37 = vpop.f32.mrf.mxu1 }
 0x237   :  { %v185_v38 = vsel %vm138_vm2, %v179_v37, -inf }
 0x238   :  { %v1214_v39 = vpop.f32.mrf.mxu1  ;;  %186 = vmax.xlane.f32.xlu0 %v185_v38 }
 0x23a   :  { %v182_v40 = vpop.f32.mrf.mxu1 }
 0x23c   :  { %v1215_v41 = vpop.f32.mrf.mxu1 }
 0x23e   :  { %v291_v42 = vpop.f32.mrf.mxu1 }
 0x23f   :  { %v297_v43 = vsel %vm138_vm2, %v291_v42, -inf }
 0x240   :  { %v1226_v44 = vpop.f32.mrf.mxu1  ;;  %298 = vmax.xlane.f32.xlu1 %v297_v43 }
 0x242   :  { %v294_v45 = vpop.f32.mrf.mxu1 }
 0x244   :  { %v1227_v46 = vpop.f32.mrf.mxu1 }
 0x246   :  { %v407_v47 = vpop.f32.mrf.mxu1 }
 0x247   :  { %v413_v48 = vsel %vm138_vm2, %v407_v47, -inf }
 0x248   :  { %v1238_v49 = vpop.f32.mrf.mxu1  ;;  %414 = vmax.xlane.f32.xlu0 %v413_v48 }
 0x24a   :  { %v410_v50 = vpop.f32.mrf.mxu1 }
 0x24c   :  { %v1239_v51 = vpop.f32.mrf.mxu1 }
 0x24e   :  { %v1604_v52 = vpop.f32.mrf.mxu1 }
 0x24f   :  { %v529_v53 = vsel %vm138_vm2, %v1604_v52, -inf }
 0x250   :  { %v1250_v54 = vpop.f32.mrf.mxu1  ;;  %530 = vmax.xlane.f32.xlu0 %v529_v53 }
 0x252   :  { %v526_v55 = vpop.f32.mrf.mxu1 }
 0x254   :  { %v1251_v56 = vpop.f32.mrf.mxu1 }
 0x256   :  { %v1608_v57 = vpop.f32.mrf.mxu1 }
 0x257   :  { %v644_v58 = vsel %vm138_vm2, %v1608_v57, -inf }
 0x258   :  { %645 = vmax.xlane.f32.xlu1 %v644_v58  ;;  %v1262_v59 = vpop.f32.mrf.mxu1 }
 0x25a   :  { %v641_v60 = vpop.f32.mrf.mxu1 }
 0x25c   :  { %v1263_v61 = vpop.f32.mrf.mxu1 }
 0x25e   :  { %v749_v62 = vpop.f32.mrf.mxu1 }
 0x25f   :  { %v755_v63 = vsel %vm138_vm2, %v749_v62, -inf }
 0x260   :  { %756 = vmax.xlane.f32.xlu0 %v755_v63  ;;  %v1274_v1 = vpop.f32.mrf.mxu1 }
 0x262   :  { %v752_v2 = vpop.f32.mrf.mxu1 }
 0x264   :  { %v1275_v3 = vpop.f32.mrf.mxu1 }
 0x266   :  { %v864_v4 = vpop.f32.mrf.mxu1 }
 0x267   :  { %v870_v5 = vsel %vm138_vm2, %v864_v4, -inf }
 0x268   :  { %871 = vmax.xlane.f32.xlu1 %v870_v5  ;;  %v1286_v6 = vpop.f32.mrf.mxu1 }
 0x26a   :  { %v867_v7 = vpop.f32.mrf.mxu1 }
 0x26c   :  { %v1287_v8 = vpop.f32.mrf.mxu1 }
 0x26e   :  { %v1614_v9 = vpop.f32.mrf.mxu1 }
 0x26f   :  { %v985_v15 = vsel %vm138_vm2, %v1614_v9, -inf }
 0x270   :  { %v1298_v10 = vpop.f32.mrf.mxu1 }
 0x272   :  { %v982_v11 = vpop.f32.mrf.mxu1 }
 0x274   :  { %v1299_v12 = vpop.f32.mrf.mxu1 }
 0x276   :  { %309 = vrot.lane.b32.xlu0 %v1540_v13, %s1474_s17 }
 0x279   :  { %197 = vrot.lane.b32.xlu1 %v1540_v13, %s1459_s21 }
 0x295   :  { %986 = vmax.xlane.f32.xlu0 %v985_v15 }
 0x2c1   :  { %v187_v16 = vpop.xlane.xlu0 %186 }
 0x2c2   :  { %v188_v17 = vsub.f32 %v179_v37, %v187_v16 }
 0x2c4   :  { %v189_v18 = vmul.f32 1.442695, %v188_v17 }
 0x2c6   :  { %1340 = vpow2.f32 %v189_v18 }
 0x2c9   :  { %v299_v19 = vpop.xlane.xlu1 %298 }
 0x2ca   :  { %v300_v20 = vsub.f32 %v291_v42, %v299_v19 }
 0x2cc   :  { %v301_v21 = vmul.f32 1.442695, %v300_v20 }
 0x2ce   :  { %1342 = vpow2.f32 %v301_v21 }
 0x2d1   :  { %v415_v22 = vpop.xlane.xlu0 %414 }
 0x2d2   :  { %v416_v23 = vsub.f32 %v407_v47, %v415_v22 }
 0x2d3   :  { %v1622_v24 = vpop.eup %1340 }
 0x2d4   :  { %v417_v25 = vmul.f32 1.442695, %v416_v23  ;;  %v191_v26 = vsel %vm138_vm2, %v1622_v24, 0.0 }
 0x2d5   :  { %192 = vadd.xlane.f32.xlu1 %v191_v26 }
 0x2d6   :  { %1344 = vpow2.f32 %v417_v25 }
 0x2d9   :  { %v531_v34 = vpop.xlane.xlu0 %530 }
 0x2da   :  { %v532_v36 = vsub.f32 %v1604_v52, %v531_v34 }
 0x2db   :  { %v1626_v27 = vpop.eup %1342 }
 0x2dc   :  { %v303_v28 = vsel %vm138_vm2, %v1626_v27, 0.0  ;;  %v533_v37 = vmul.f32 1.442695, %v532_v36 }
 0x2dd   :  { %304 = vadd.xlane.f32.xlu0 %v303_v28 }
 0x2de   :  { %1346 = vpow2.f32 %v533_v37 }
 0x2e1   :  { %v646_v31 = vpop.xlane.xlu1 %645 }
 0x2e2   :  { %v647_v38 = vsub.f32 %v1608_v57, %v646_v31 }
 0x2e3   :  { %v1630_v29 = vpop.eup %1344 }
 0x2e4   :  { %v419_v30 = vsel %vm138_vm2, %v1630_v29, 0.0  ;;  %v648_v41 = vmul.f32 1.442695, %v647_v38 }
 0x2e5   :  { %420 = vadd.xlane.f32.xlu1 %v419_v30 }
 0x2e6   :  { %1348 = vpow2.f32 %v648_v41 }
 0x2e9   :  { %v757_v39 = vpop.xlane.xlu0 %756 }
 0x2ea   :  { %v758_v40 = vsub.f32 %v749_v62, %v757_v39 }
 0x2eb   :  { %v1347_v45 = vpop.eup %1346 }
 0x2ec   :  { %v759_v43 = vmul.f32 1.442695, %v758_v40 }
 0x2ed   :  { %v310_v52 = vpop.permute.xlu0 %309 }
 0x2ee   :  { %1350 = vpow2.f32 %v759_v43  ;;  %v315_v1 = vsel %vm202_vm3, %v310_v52, 0 }
 0x2f1   :  { %v872_v32 = vpop.xlane.xlu1 %871 }
 0x2f2   :  { %v873_v42 = vsub.f32 %v864_v4, %v872_v32 }
 0x2f3   :  { %425 = vrot.lane.b32.xlu0 %v1540_v13, %s1475_s18  ;;  %v1643_v46 = vpop.eup %1348 }
 0x2f4   :  { %v874_v44 = vmul.f32 1.442695, %v873_v42  ;;  %v650_v48 = vsel %vm138_vm2, %v1643_v46, 0.0 }
 0x2f5   :  { %v198_v33 = vpop.permute.xlu1 %197 }
 0x2f6   :  { %v204_v35 = vsel %vm202_vm3, %v198_v33, 0  ;;  %541 = vrot.lane.b32.xlu1 %v1540_v13, %s1476_s19  ;;  %1352 = vpow2.f32 %v874_v44  ;;  %v535_v13 = vsel %vm138_vm2, %v1347_v45, 0.0 }
 0x2f7   :  { %1217 = vmatpush3.bf16.msra.mxu0 %v204_v35 }
 0x2f8   :  { %1228 = vmatprep.subr.bf16.mxu0 %v1465_v0 }
 0x2fb   :  { %v1645_v47 = vpop.eup %1350 }
 0x2fc   :  { %v761_v50 = vsel %vm138_vm2, %v1645_v47, 0.0 }
 0x303   :  { %v1649_v49 = vpop.eup %1352 }
 0x304   :  { %v876_v51 = vsel %vm138_vm2, %v1649_v49, 0.0 }
 0x312   :  { %536 = vadd.xlane.f32.xlu0 %v535_v13 }
 0x316   :  { %651 = vadd.xlane.f32.xlu0 %v650_v48 }
 0x31a   :  { %762 = vadd.xlane.f32.xlu1 %v761_v50  ;;  %877 = vadd.xlane.f32.xlu0 %v876_v51 }
 0x31e   :  { %v987_v53 = vpop.xlane.xlu0 %986 }
 0x31f   :  { %v988_v54 = vsub.f32 %v1614_v9, %v987_v53 }
 0x321   :  { %v989_v55 = vmul.f32 1.442695, %v988_v54 }
 0x323   :  { %1354 = vpow2.f32 %v989_v55 }
 0x32b   :  { %767 = vrot.lane.b32.xlu1 %v1549_v14, %s1474_s17 }
 0x32f   :  { %882 = vrot.lane.b32.xlu1 %v1549_v14, %s1475_s18 }
 0x330   :  { %v1660_v56 = vpop.eup %1354 }
 0x331   :  { %v991_v57 = vsel %vm138_vm2, %v1660_v56, 0.0 }
 0x332   :  { %992 = vadd.xlane.f32.xlu0 %v991_v57 }
 0x333   :  { %997 = vrot.lane.b32.xlu1 %v1549_v14, %s1476_s19 }
 0x348   :  { %656 = vrot.lane.b32.xlu0 %v1549_v14, %s1459_s21  ;;  %s1478_s21 = smov 24  }
 0x35e   :  { %v193_v58 = vpop.xlane.xlu1 %192 }
 0x35f   :  { %1356 = vrcp.f32 %v193_v58 }
 0x366   :  { %v305_v59 = vpop.xlane.xlu0 %304 }
 0x367   :  { %1358 = vrcp.f32 %v305_v59 }
 0x36a   :  { %v426_v3 = vpop.permute.xlu0 %425 }
 0x36b   :  { %v431_v5 = vsel %vm202_vm3, %v426_v3, 0 }
 0x36c   :  { %v1357_v60 = vpop.eup %1356 }
 0x36d   :  { %v195_v61 = vmul.f32 %v1357_v60, %v1622_v24 }
 0x36e   :  { %v421_v62 = vpop.xlane.xlu1 %420 }
 0x36f   :  { %1360 = vrcp.f32 %v421_v62  ;;  %v196_v63 = vpack.c.bf16 %v195_v61, %v195_v61 }
 0x371   :  { %1219 = vmatmul.mubr.msk.bf16.vlgmr.msra.gmra.mxu0 %vm138_vm2, %v196_v63  ;;  %v1338_v63 = vld [vmem:[#allocation8 + $0x8] sm:$0xff]  }
 0x372   :  { %1229 = vmatpush3.bf16.msra.mxu0 %v315_v1  ;;  %1230 = vmatprep.mubr.msk.bf16.mxu0 %vm1466_vm0, %v1465_v0  ;;  %v542_v8 = vpop.permute.xlu1 %541 }
 0x373   :  { %1240 = vmatprep.subr.bf16.mxu0 %v1465_v0  ;;  %v547_v10 = vsel %vm202_vm3, %v542_v8, 0  ;;  %1307 = vmatpush3.bf16.msra.mxu1 %v1338_v63 }
 0x374   :  { %v1359_v14 = vpop.eup %1358  ;;  %1308 = vmatprep.subr.bf16.mxu1 %v1465_v0 }
 0x375   :  { %v307_v2 = vmul.f32 %v1359_v14, %v1626_v27  ;;  %v1339_v14 = vld [vmem:[#allocation8] sm:$0xff]  }
 0x377   :  { %v308_v4 = vpack.c.bf16 %v307_v2, %v307_v2  ;;  %1309 = vmatpush3.bf16.msra.mxu1 %v1339_v14 }
 0x379   :  { %1231 = vmatmul.mubr.msk.bf16.vlgmr.msra.gmra.mxu0 %vm138_vm2, %v308_v4 }
 0x37a   :  { %1241 = vmatpush3.bf16.msra.mxu0 %v431_v5  ;;  %1242 = vmatprep.mubr.msk.bf16.mxu0 %vm1466_vm0, %v1465_v0 }
 0x37b   :  { %1252 = vmatprep.subr.bf16.mxu0 %v1465_v0 }
 0x37c   :  { %v1361_v6 = vpop.eup %1360 }
 0x37d   :  { %v423_v7 = vmul.f32 %v1361_v6, %v1630_v29 }
 0x37f   :  { %v424_v9 = vpack.c.bf16 %v423_v7, %v423_v7 }
 0x381   :  { %1243 = vmatmul.mubr.msk.bf16.vlgmr.msra.gmra.mxu0 %vm138_vm2, %v424_v9 }
 0x382   :  { %1253 = vmatpush3.bf16.msra.mxu0 %v547_v10  ;;  %1254 = vmatprep.mubr.msk.bf16.mxu0 %vm1466_vm0, %v1465_v0 }
 0x383   :  { %1264 = vmatprep.subr.bf16.mxu0 %v1465_v0 }
 0x39b   :  { %v537_v11 = vpop.xlane.xlu0 %536 }
 0x39c   :  { %1362 = vrcp.f32 %v537_v11 }
 0x39f   :  { %v652_v16 = vpop.xlane.xlu0 %651 }
 0x3a0   :  { %1364 = vrcp.f32 %v652_v16 }
 0x3a3   :  { %v763_v18 = vpop.xlane.xlu1 %762  ;;  %v878_v19 = vpop.xlane.xlu0 %877 }
 0x3a4   :  { %1366 = vrcp.f32 %v763_v18 }
 0x3a5   :  { %1368 = vrcp.f32 %v878_v19 }
 0x3a7   :  { %v768_v25 = vpop.permute.xlu1 %767 }
 0x3a8   :  { %v773_v28 = vsel %vm202_vm3, %v768_v25, 0 }
 0x3a9   :  { %v1363_v12 = vpop.eup %1362 }
 0x3aa   :  { %v539_v15 = vmul.f32 %v1363_v12, %v1347_v45 }
 0x3ab   :  { %v883_v30 = vpop.permute.xlu1 %882 }
 0x3ac   :  { %v540_v17 = vpack.c.bf16 %v539_v15, %v539_v15  ;;  %v888_v33 = vsel %vm202_vm3, %v883_v30, 0 }
 0x3ad   :  { %v1365_v20 = vpop.eup %1364 }
 0x3ae   :  { %1255 = vmatmul.mubr.msk.bf16.vlgmr.msra.gmra.mxu0 %vm138_vm2, %v540_v17  ;;  %v654_v22 = vmul.f32 %v1365_v20, %v1643_v46  ;;  %v1160_v20 = vld [vmem:[%s1731_s4] ss:$0 sm:$0xff] }
 0x3af   :  { %1266 = vmatprep.mubr.msk.bf16.mxu0 %vm1466_vm0, %v1465_v0  ;;  %v998_v35 = vpop.permute.xlu1 %997 }
 0x3b0   :  { %v655_v26 = vpack.c.bf16 %v654_v22, %v654_v22  ;;  %v1003_v38 = vsel %vm202_vm3, %v998_v35, 0 }
 0x3b1   :  { %v1367_v27 = vpop.eup %1366 }
 0x3b2   :  { %v765_v29 = vmul.f32 %v1367_v27, %v1645_v47  ;;  %v1369_v32 = vpop.eup %1368 }
 0x3b3   :  { %v880_v34 = vmul.f32 %v1369_v32, %v1649_v49 }
 0x3b4   :  { %v766_v31 = vpack.c.bf16 %v765_v29, %v765_v29 }
 0x3b5   :  { %v881_v36 = vpack.c.bf16 %v880_v34, %v880_v34 }
 0x3bb   :  { %v993_v21 = vpop.xlane.xlu0 %992 }
 0x3bc   :  { %1370 = vrcp.f32 %v993_v21 }
 0x3bf   :  { %v657_v23 = vpop.permute.xlu0 %656 }
 0x3c0   :  { %v662_v24 = vsel %vm202_vm3, %v657_v23, 0 }
 0x3c1   :  { %1265 = vmatpush3.bf16.msra.mxu0 %v662_v24 }
 0x3c2   :  { %1276 = vmatprep.subr.bf16.mxu0 %v1465_v0 }
 0x3c4   :  { %1267 = vmatmul.mubr.msk.bf16.vlgmr.msra.gmra.mxu0 %vm138_vm2, %v655_v26 }
 0x3c5   :  { %1277 = vmatpush3.bf16.msra.mxu0 %v773_v28  ;;  %1278 = vmatprep.mubr.msk.bf16.mxu0 %vm1466_vm0, %v1465_v0 }
 0x3c6   :  { %1288 = vmatprep.subr.bf16.mxu0 %v1465_v0 }
 0x3c9   :  { %v1371_v37 = vpop.eup %1370 }
 0x3ca   :  { %v995_v39 = vmul.f32 %v1371_v37, %v1660_v56 }
 0x3cc   :  { %1279 = vmatmul.mubr.msk.bf16.vlgmr.msra.gmra.mxu0 %vm138_vm2, %v766_v31  ;;  %v996_v40 = vpack.c.bf16 %v995_v39, %v995_v39 }
 0x3cd   :  { %1289 = vmatpush3.bf16.msra.mxu0 %v888_v33  ;;  %1290 = vmatprep.mubr.msk.bf16.mxu0 %vm1466_vm0, %v1465_v0 }
 0x3ce   :  { %1300 = vmatprep.subr.bf16.mxu0 %v1465_v0 }
 0x3d4   :  { %1291 = vmatmul.mubr.msk.bf16.vlgmr.msra.gmra.mxu0 %vm138_vm2, %v881_v36 }
 0x3d5   :  { %1301 = vmatpush3.bf16.msra.mxu0 %v1003_v38  ;;  %1302 = vmatprep.mubr.msk.bf16.mxu0 %vm1466_vm0, %v1465_v0 }
 0x3dc   :  { %1303 = vmatmul.mubr.msk.bf16.vlgmr.msra.gmra.mxu0 %vm138_vm2, %v996_v40 }
 0x431   :  { %v240_v41 = vpop.f32.mrf.mxu0 }
 0x432   :  { %246 = vst.msk [vmem:[#allocation2] sm:$0xff] %vm138_vm2, %v240_v41 }
 0x433   :  { %v1220_v42 = vpop.f32.mrf.mxu0 }
 0x435   :  { %v243_v43 = vpop.f32.mrf.mxu0 }
 0x437   :  { %v1221_v44 = vpop.f32.mrf.mxu0 }
 0x439   :  { %v351_v45 = vpop.f32.mrf.mxu0 }
 0x43a   :  { %358 = vrot.lane.b32.xlu1 %v351_v45, %s1463_s29 }
 0x43b   :  { %v1232_v13 = vpop.f32.mrf.mxu0 }
 0x43d   :  { %v354_v46 = vpop.f32.mrf.mxu0 }
 0x43f   :  { %v1233_v47 = vpop.f32.mrf.mxu0 }
 0x441   :  { %v467_v48 = vpop.f32.mrf.mxu0 }
 0x442   :  { %474 = vrot.lane.b32.xlu0 %v467_v48, %s1477_s20 }
 0x443   :  { %v1244_v49 = vpop.f32.mrf.mxu0 }
 0x445   :  { %v470_v50 = vpop.f32.mrf.mxu0 }
 0x447   :  { %v1245_v51 = vpop.f32.mrf.mxu0 }
 0x46e   :  { %v583_v52 = vpop.f32.mrf.mxu0 }
 0x46f   :  { %590 = vrot.lane.b32.xlu0 %v583_v52, %s1478_s21 }
 0x470   :  { %v1256_v53 = vpop.f32.mrf.mxu0 }
 0x472   :  { %v586_v54 = vpop.f32.mrf.mxu0 }
 0x474   :  { %v1257_v55 = vpop.f32.mrf.mxu0 }
 0x484   :  { %v698_v56 = vpop.f32.mrf.mxu0 }
 0x485   :  { %704 = vst.msk [vmem:[#allocation2 + $0x8] sm:$0xff] %vm138_vm2, %v698_v56 }
 0x486   :  { %v1268_v57 = vpop.f32.mrf.mxu0 }
 0x488   :  { %v701_v58 = vpop.f32.mrf.mxu0 }
 0x48a   :  { %v1269_v59 = vpop.f32.mrf.mxu0 }
 0x48c   :  { %v809_v60 = vpop.f32.mrf.mxu0 }
 0x48d   :  { %816 = vrot.lane.b32.xlu1 %v809_v60, %s1463_s29 }
 0x48e   :  { %v1280_v61 = vpop.f32.mrf.mxu0 }
 0x490   :  { %v812_v62 = vpop.f32.mrf.mxu0 }
 0x492   :  { %v1281_v1 = vpop.f32.mrf.mxu0 }
 0x494   :  { %v924_v2 = vpop.f32.mrf.mxu0 }
 0x495   :  { %931 = vrot.lane.b32.xlu1 %v924_v2, %s1477_s20 }
 0x496   :  { %v1292_v3 = vpop.f32.mrf.mxu0 }
 0x498   :  { %v927_v4 = vpop.f32.mrf.mxu0 }
 0x49a   :  { %v1293_v5 = vpop.f32.mrf.mxu0 }
 0x49c   :  { %v1039_v6 = vpop.f32.mrf.mxu0 }
 0x49d   :  { %1046 = vrot.lane.b32.xlu1 %v1039_v6, %s1478_s21 }
 0x49e   :  { %v1304_v7 = vpop.f32.mrf.mxu0 }
 0x4a0   :  { %v1042_v8 = vpop.f32.mrf.mxu0 }
 0x4a2   :  { %v1305_v9 = vpop.f32.mrf.mxu0 }
 0x4ac   :  { %v359_v10 = vpop.permute.xlu1 %358 }
 0x4ad   :  { %362 = vst.msk [vmem:[#allocation2] sm:$0xff] %vm361_vm4, %v359_v10 }
 0x4b4   :  { %v475_v11 = vpop.permute.xlu0 %474 }
 0x4b5   :  { %478 = vst.msk [vmem:[#allocation2] sm:$0xff] %vm477_vm5, %v475_v11 }
 0x4e1   :  { %v591_v12 = vpop.permute.xlu0 %590 }
 0x4e2   :  { %594 = vst.msk [vmem:[#allocation2] sm:$0xff] %vm593_vm6, %v591_v12 }
 0x4e9   :  { %v1050_v17 = vld [vmem:[#allocation2] sm:$0xff] }
 0x4ff   :  { %v817_v0 = vpop.permute.xlu1 %816 }
 0x500   :  { %819 = vst.msk [vmem:[#allocation2 + $0x8] sm:$0xff] %vm361_vm4, %v817_v0 }
 0x507   :  { %v932_v15 = vpop.permute.xlu1 %931 }
 0x508   :  { %934 = vst.msk [vmem:[#allocation2 + $0x8] sm:$0xff] %vm477_vm5, %v932_v15 }
 0x50f   :  { %v1047_v16 = vpop.permute.xlu1 %1046 }
 0x510   :  { %1049 = vst.msk [vmem:[#allocation2 + $0x8] sm:$0xff] %vm593_vm6, %v1047_v16 }
 0x517   :  { %v1051_v18 = vld [vmem:[#allocation2 + $0x8] sm:$0xff] }
 0x518   :  { %v1052_v19 = vpack.c.bf16 %v1051_v18, %v1050_v17 }
 0x51a   :  { %1311 = vmatmul.mubr.msk.bf16.vlgmr.msra.gmra.mxu1 %vm89_vm1, %v1052_v19 }
 0x5da   :  { %v1113_v21 = vpop.f32.mrf.mxu1 }
 0x5db   :  { %v1114_v22 = vadd.f32 %v1160_v20, %v1113_v21 }
 0x5dc   :  { %v1312_v23 = vpop.f32.mrf.mxu1 }
 0x5dd   :  { %1120 = vst.msk [vmem:[#allocation9] sm:$0xff] %vm89_vm1, %v1114_v22 }
 0x5de   :  { %v1116_v24 = vpop.f32.mrf.mxu1 }
 0x5df   :  { %v1117_v25 = vadd.f32 %v1160_v20, %v1116_v24 }
 0x5e0   :  { %v1313_v26 = vpop.f32.mrf.mxu1 }
 0x5e1   :  { %1121 = vst.msk [vmem:[#allocation9 + $0x8] sm:$0xff] %vm89_vm1, %v1117_v25 }
 0x5e2   :  { %1443 = shalt.err (!%p1440_p5)
}
 0x5e3   :  { %1133 = dma.vmem_to_hbm [thread:$0]  %s1128_s25, 256, %s1732_s5, [#allocation5], %s1462_s28, %s1462_s28, %s1463_s29  }
 0x5e4   :  { %1456 = dma.done.wait [#allocation5], 256  }
 0x5e5   :  { %1457 = vsyncadd [#allocation5], 4294967040 }
 0x5e6   :  { %1137 = vsyncpa [#allocation4], 1 }
 0x5e7   :  { %1138 = vsyncpa [#allocation7], 1 }
 0x5e8   :  { %1139 = vsyncpa [#allocation5], 1 }

</bundles_post_ra>
